<compile_context>
chip_gen: v7x
topology: tpu7x:2x2x1
jax: 0.10.0
libtpu: 0.0.40
codegen_flags: <defaults>
</compile_context>

<pallas_src>
import functools

import jax
import jax.numpy as jnp
from jax.experimental import pallas as pl
from jax.experimental.pallas import tpu as pltpu

# ----------------------------- problem sizes -----------------------------
B = 2                  # number of waveforms ("count")
N_FILTER = 4           # n_filter band-pass channels
T = 256                # waveform length (stand-in for the 20000 SPICE time steps)
K = 9                  # FIR taps per band-pass filter (odd -> symmetric 'same' padding)
PAD = K // 2
TP = T + K - 1         # padded waveform length (264)
HOP = 16               # hop_length for the IAF spectrogram
N_HOPS = T // HOP      # time bins after hop integration (16)
MAX_SAMPLE_LEN = 8     # max_sample_len used by RandomCrop (time dim after crop)
N_CLASSES = 10         # backbone output classes
THETA = 0.5            # IAF firing threshold

LANE = 128
TC = 128                                   # reduction (time-chunk) tile
TP_PAD = pl.cdiv(TP, TC) * TC              # 384: 128-aligned reduction extent
FNH = N_FILTER * N_HOPS                    # 64 flat (filter, hop) features
FNH_PAD = pl.cdiv(FNH, LANE) * LANE        # 128: lane-dense spike width
C_PAD = pl.cdiv(N_CLASSES, LANE) * LANE    # 128: lane-dense logits width

assert N_HOPS >= MAX_SAMPLE_LEN            # deterministic crop (no pad_if_needed branch)


# ----------------- fused kernel: (BPF+pool) matmul -> IAF -> backbone -----------------
def lafe_kernel(xp_ref, mop_ref, bbw_ref, bbb_ref, *rest, write_spk):
    """Grid = (TP_PAD // TC,) reduction over time chunks.

    xp_ref:  (B, TC)           time chunk of the 'same'-padded waveforms
    mop_ref: (TC, FNH_PAD)     folded FIR-tap x hop-pool operator chunk
    bbw_ref: (FNH_PAD, C_PAD)  crop-folded, lane-padded backbone weight
    bbb_ref: (1, C_PAD)        lane-padded backbone bias
    out_ref: (B, C_PAD)        lane-dense logits
    spk_ref: (B, FNH_PAD)      lane-dense IAF spike counts (only if write_spk)
    acc_ref: (B, FNH_PAD)      VMEM charge accumulator (scratch)
    """
    if write_spk:
        out_ref, spk_ref, acc_ref = rest
    else:
        out_ref, acc_ref = rest
        spk_ref = None

    k = pl.program_id(0)

    @pl.when(k == 0)
    def _():
        acc_ref[...] = jnp.zeros_like(acc_ref)

    # One MXU matmul per chunk; batch is packed into the M dimension.
    acc_ref[...] += jnp.dot(xp_ref[...], mop_ref[...],
                            preferred_element_type=jnp.float32)

    @pl.when(k == pl.num_programs(0) - 1)
    def _():
        # Integrate-and-fire spike count per hop window (padded columns stay 0).
        spikes = jnp.floor(jnp.maximum(acc_ref[...], 0.0) * jnp.float32(1.0 / THETA))
        if write_spk:
            spk_ref[...] = spikes
        # Crop + linear backbone as one lane-dense MXU matmul.
        out_ref[...] = (jnp.dot(spikes, bbw_ref[...],
                                preferred_element_type=jnp.float32)
                        + bbb_ref[...])


def _lafe_pallas_call(return_spk):
    kernel = functools.partial(lafe_kernel, write_spk=return_spk)
    num_chunks = TP_PAD // TC

    in_specs = [
        pl.BlockSpec((B, TC), lambda k: (0, k)),            # xp time chunk
        pl.BlockSpec((TC, FNH_PAD), lambda k: (k, 0)),       # operator row chunk
        pl.BlockSpec((FNH_PAD, C_PAD), lambda k: (0, 0)),    # backbone weight (resident)
        pl.BlockSpec((1, C_PAD), lambda k: (0, 0)),          # backbone bias (resident)
    ]
    logits_spec = pl.BlockSpec((B, C_PAD), lambda k: (0, 0))
    if return_spk:
        out_shape = (jax.ShapeDtypeStruct((B, C_PAD), jnp.float32),
                     jax.ShapeDtypeStruct((B, FNH_PAD), jnp.float32))
        out_specs = (logits_spec, pl.BlockSpec((B, FNH_PAD), lambda k: (0, 0)))
    else:
        out_shape = jax.ShapeDtypeStruct((B, C_PAD), jnp.float32)
        out_specs = logits_spec

    bytes_out = B * C_PAD * 4 + (B * FNH_PAD * 4 if return_spk else 0)
    cost = pl.CostEstimate(
        flops=2 * B * TP_PAD * FNH_PAD + 2 * B * FNH_PAD * C_PAD,
        transcendentals=0,
        bytes_accessed=(B * TP_PAD + TP_PAD * FNH_PAD + FNH_PAD * C_PAD + C_PAD) * 4
        + bytes_out,
    )

    return pl.pallas_call(
        kernel,
        grid=(num_chunks,),
        in_specs=in_specs,
        out_specs=out_specs,
        out_shape=out_shape,
        scratch_shapes=[pltpu.VMEM((B, FNH_PAD), jnp.float32)],
        compiler_params=pltpu.CompilerParams(dimension_semantics=("arbitrary",)),
        cost_estimate=cost,
    )


# ------------------------- parameter folding (wrapper side) -------------------------
def fold_parameters(fir_taps, bb_w, bb_b):
    """Fold FIR taps + hop pooling into one operator, and crop into the backbone weight."""
    # Block-ones pooling matrix: pool[t, h] = 1 iff hop h covers time step t.
    t_idx = jnp.arange(T)[:, None]
    h_idx = jnp.arange(N_HOPS)[None, :]
    pool = ((t_idx // HOP) == h_idx).astype(jnp.float32)                   # (T, N_HOPS)

    # shifts[k, u, h] = pool[u - k, h], zero outside [0, T).
    shifts = jnp.stack(
        [jnp.pad(pool, ((k, K - 1 - k), (0, 0))) for k in range(K)], axis=0)  # (K, TP, NH)

    # charge[b, f*NH + h] = sum_u xp[b, u] * sum_k w[f, k] * pool[u - k, h]
    mop = jnp.einsum("fk,kuh->ufh", fir_taps, shifts).reshape(TP, FNH)     # (TP, FNH)
    mop = jnp.pad(mop, ((0, TP_PAD - TP), (0, FNH_PAD - FNH)))             # (TP_PAD, FNH_PAD)

    # Backbone weight with the deterministic offset-0 crop folded in (hops >= MS get
    # zero weight) and lane padding; flat feature index of the reference is f*MS + m.
    bbw3 = bb_w.reshape(N_FILTER, MAX_SAMPLE_LEN, N_CLASSES)
    bbw_full = jnp.zeros((N_FILTER, N_HOPS, N_CLASSES), jnp.float32)
    bbw_full = bbw_full.at[:, :MAX_SAMPLE_LEN, :].set(bbw3)
    bbw_pad = jnp.pad(bbw_full.reshape(FNH, N_CLASSES),
                      ((0, FNH_PAD - FNH), (0, C_PAD - N_CLASSES)))        # (FNH_PAD, C_PAD)
    bbb_pad = jnp.pad(bb_b, ((0, 0), (0, C_PAD - N_CLASSES)))              # (1, C_PAD)
    return mop, bbw_pad, bbb_pad


# ------------------------------------ forward ------------------------------------
@functools.partial(jax.jit, static_argnames=("spk",))
def lafe_spice_v2_forward(waveform, mop, bbw_pad, bbb_pad, spk=False):
    """waveform: (B, 1, T) float32 (PyTorch NCT layout) -> logits (B, N_CLASSES)."""
    x = waveform[:, 0, :]                                                  # (B, T)
    # 'same' FIR padding + zero-pad to the 128-aligned reduction extent (the extra
    # operator rows are zero, so the padding contributes nothing).
    xp = jnp.pad(x, ((0, 0), (PAD, TP_PAD - T - PAD)))                     # (B, TP_PAD)

    if spk:
        logits_pad, spk_pad = _lafe_pallas_call(True)(xp, mop, bbw_pad, bbb_pad)
        spikes = spk_pad[:, :FNH].reshape(B, N_FILTER, N_HOPS)
        return logits_pad[:, :N_CLASSES], spikes

    logits_pad = _lafe_pallas_call(False)(xp, mop, bbw_pad, bbb_pad)
    return logits_pad[:, :N_CLASSES]


# ---------------------------- deterministic init ----------------------------
def init_params_and_inputs():
    key = jax.random.PRNGKey(0)
    k_fir, k_w, k_b, k_x = jax.random.split(key, 4)
    fir_taps = 0.3 * jax.random.normal(k_fir, (N_FILTER, K), jnp.float32)
    bb_w = 0.05 * jax.random.normal(k_w, (N_FILTER * MAX_SAMPLE_LEN, N_CLASSES), jnp.float32)
    bb_b = 0.01 * jax.random.normal(k_b, (1, N_CLASSES), jnp.float32)
    waveform = jax.random.normal(k_x, (B, 1, T), jnp.float32)
    return fir_taps, bb_w, bb_b, waveform


if __name__ == "__main__":
    fir_taps, bb_w, bb_b, waveform = init_params_and_inputs()
    mop, bbw_pad, bbb_pad = fold_parameters(fir_taps, bb_w, bb_b)

    out = lafe_spice_v2_forward(waveform, mop, bbw_pad, bbb_pad, spk=False)
    out = jax.block_until_ready(out)
    assert out.shape == (B, N_CLASSES) and out.dtype == jnp.float32
    assert bool(jnp.all(jnp.isfinite(out)))

    out2, spks = lafe_spice_v2_forward(waveform, mop, bbw_pad, bbb_pad, spk=True)
    jax.block_until_ready((out2, spks))
    assert spks.shape == (B, N_FILTER, N_HOPS) and spks.dtype == jnp.float32
    assert bool(jnp.all(jnp.isfinite(spks)))
    assert bool(jnp.allclose(out, out2))       # spk=True / spk=False variants agree

    print("KERNEL_OK")
</pallas_src>

<mosaic_0001>
module attributes {stable_mosaic.version = 11 : i64} {
  func.func @lafe_kernel(%arg0: i32, %arg1: memref<2x128xf32, #tpu.memory_space<vmem>>, %arg2: memref<128x128xf32, #tpu.memory_space<vmem>>, %arg3: memref<128x128xf32, #tpu.memory_space<vmem>>, %arg4: memref<1x128xf32, #tpu.memory_space<vmem>>, %arg5: memref<2x128xf32, #tpu.memory_space<vmem>>, %arg6: memref<2x128xf32, #tpu.memory_space<vmem>>) attributes {dimension_semantics = [#tpu.dimension_semantics<arbitrary>], iteration_bounds = array<i64: 3>, scalar_prefetch = 0 : i64, scratch_operands = 1 : i64, tpu.core_type = #tpu.core_type<tc>, window_params = [{transform_indices = @transform_0, window_bounds = array<i64: 2, 128>}, {transform_indices = @transform_1, window_bounds = array<i64: 128, 128>}, {pipeline_mode = #tpu.pipeline_mode<synchronous>, transform_indices = @transform_2, window_bounds = array<i64: 128, 128>}, {pipeline_mode = #tpu.pipeline_mode<synchronous>, transform_indices = @transform_3, window_bounds = array<i64: 1, 128>}, {pipeline_mode = #tpu.pipeline_mode<synchronous>, transform_indices = @transform_4, window_bounds = array<i64: 2, 128>}]} {
    %c0_i32 = arith.constant 0 : i32
    %0 = arith.cmpi eq, %arg0, %c0_i32 : i32
    %1 = arith.extui %0 : i1 to i32
    %c0_i32_0 = arith.constant 0 : i32
    %2 = arith.cmpi ne, %1, %c0_i32_0 : i32
    scf.if %2 {
      %cst_9 = arith.constant 0.000000e+00 : f32
      %12 = vector.broadcast %cst_9 : f32 to vector<2x128xf32>
      %c0_10 = arith.constant 0 : index
      %c0_11 = arith.constant 0 : index
      %13 = vector.load %arg6[%c0_10, %c0_11] : memref<2x128xf32, #tpu.memory_space<vmem>>, vector<2x128xf32>
      tpu.vector_store %arg6[%c0_10, %c0_11], %12 {strides = array<i32>} : memref<2x128xf32, #tpu.memory_space<vmem>>, vector<2x128xf32>,
    } else {
    }
    %c0 = arith.constant 0 : index
    %c0_1 = arith.constant 0 : index
    %3 = vector.load %arg6[%c0, %c0_1] : memref<2x128xf32, #tpu.memory_space<vmem>>, vector<2x128xf32>
    %c0_2 = arith.constant 0 : index
    %c0_3 = arith.constant 0 : index
    %4 = vector.load %arg1[%c0_2, %c0_3] : memref<2x128xf32, #tpu.memory_space<vmem>>, vector<2x128xf32>
    %c0_4 = arith.constant 0 : index
    %c0_5 = arith.constant 0 : index
    %5 = vector.load %arg2[%c0_4, %c0_5] : memref<128x128xf32, #tpu.memory_space<vmem>>, vector<128x128xf32>
    %cst = arith.constant dense<0.000000e+00> : vector<2x128xf32>
    %6 = tpu.matmul %4, %5, %cst {dimension_numbers = #tpu.dot_dimension_numbers<[1], [0], [0], [1], [0, 0, 1, 1], [], []>} : vector<2x128xf32>, vector<128x128xf32>, vector<2x128xf32> -> vector<2x128xf32>
    %7 = arith.addf %3, %6 : vector<2x128xf32>
    %c0_6 = arith.constant 0 : index
    %c0_7 = arith.constant 0 : index
    %8 = vector.load %arg6[%c0_6, %c0_7] : memref<2x128xf32, #tpu.memory_space<vmem>>, vector<2x128xf32>
    tpu.vector_store %arg6[%c0_6, %c0_7], %7 {strides = array<i32>} : memref<2x128xf32, #tpu.memory_space<vmem>>, vector<2x128xf32>,
    %c2_i32 = arith.constant 2 : i32
    %9 = arith.cmpi eq, %arg0, %c2_i32 : i32
    %10 = arith.extui %9 : i1 to i32
    %c0_i32_8 = arith.constant 0 : i32
    %11 = arith.cmpi ne, %10, %c0_i32_8 : i32
    scf.if %11 {
      %c0_9 = arith.constant 0 : index
      %c0_10 = arith.constant 0 : index
      %12 = vector.load %arg6[%c0_9, %c0_10] : memref<2x128xf32, #tpu.memory_space<vmem>>, vector<2x128xf32>
      %cst_11 = arith.constant 0.000000e+00 : f32
      %13 = vector.broadcast %cst_11 : f32 to vector<2x128xf32>
      %14 = arith.maximumf %12, %13 : vector<2x128xf32>
      %cst_12 = arith.constant 2.000000e+00 : f32
      %15 = vector.broadcast %cst_12 : f32 to vector<2x128xf32>
      %16 = arith.mulf %14, %15 : vector<2x128xf32>
      %17 = math.floor %16 : vector<2x128xf32>
      %c0_13 = arith.constant 0 : index
      %c0_14 = arith.constant 0 : index
      %18 = vector.load %arg3[%c0_13, %c0_14] : memref<128x128xf32, #tpu.memory_space<vmem>>, vector<128x128xf32>
      %cst_15 = arith.constant dense<0.000000e+00> : vector<2x128xf32>
      %19 = tpu.matmul %17, %18, %cst_15 {dimension_numbers = #tpu.dot_dimension_numbers<[1], [0], [0], [1], [0, 0, 1, 1], [], []>} : vector<2x128xf32>, vector<128x128xf32>, vector<2x128xf32> -> vector<2x128xf32>
      %c0_16 = arith.constant 0 : index
      %c0_17 = arith.constant 0 : index
      %20 = vector.load %arg4[%c0_16, %c0_17] : memref<1x128xf32, #tpu.memory_space<vmem>>, vector<1x128xf32>
      %21 = vector.broadcast %20 : vector<1x128xf32> to vector<2x128xf32>
      %22 = arith.addf %19, %21 : vector<2x128xf32>
      %c0_18 = arith.constant 0 : index
      %c0_19 = arith.constant 0 : index
      %23 = vector.load %arg5[%c0_18, %c0_19] : memref<2x128xf32, #tpu.memory_space<vmem>>, vector<2x128xf32>
      tpu.vector_store %arg5[%c0_18, %c0_19], %22 {strides = array<i32>} : memref<2x128xf32, #tpu.memory_space<vmem>>, vector<2x128xf32>,
    } else {
    }
    return
  }
  func.func @transform_0(%arg0: i32) -> (i32, i32) {
    %c0_i32 = arith.constant 0 : i32
    %c0_i32_0 = arith.constant 0 : i32
    return %c0_i32, %arg0 : i32, i32
  }
  func.func @transform_1(%arg0: i32) -> (i32, i32) {
    %c0_i32 = arith.constant 0 : i32
    %c0_i32_0 = arith.constant 0 : i32
    return %arg0, %c0_i32 : i32, i32
  }
  func.func @transform_2(%arg0: i32) -> (i32, i32) {
    %c0_i32 = arith.constant 0 : i32
    %c0_i32_0 = arith.constant 0 : i32
    %c0_i32_1 = arith.constant 0 : i32
    return %c0_i32, %c0_i32_0 : i32, i32
  }
  func.func @transform_3(%arg0: i32) -> (i32, i32) {
    %c0_i32 = arith.constant 0 : i32
    %c0_i32_0 = arith.constant 0 : i32
    %c0_i32_1 = arith.constant 0 : i32
    return %c0_i32, %c0_i32_0 : i32, i32
  }
  func.func @transform_4(%arg0: i32) -> (i32, i32) {
    %c0_i32 = arith.constant 0 : i32
    %c0_i32_0 = arith.constant 0 : i32
    %c0_i32_1 = arith.constant 0 : i32
    return %c0_i32, %c0_i32_0 : i32, i32
  }
}

</mosaic_0001>

<bundles_post_ra>
// kernel: lafe_spice_v2_forward.1
= control target key start
LH: loop header
LB: loop body
LE: loop exit
PB: predicated region body
PF: predicated region fallthrough
CT: control target
= control target key end

     0   :  { %9 = vsyncpa [#allocation4], 0  ;;  %s1114_s0 = inlined_call_operand.vmem [shape: f32[2,384], index: 0, kind: input, shape index: {}]   ;;  %s1115_s1 = inlined_call_operand.hbm [shape: f32[384,128], index: 1, kind: input, shape index: {}]   ;;  %s1116_s2 = inlined_call_operand.hbm [shape: f32[128,128], index: 2, kind: input, shape index: {}]   ;;  %s1117_s3 = inlined_call_operand.vmem [shape: f32[1,128], index: 3, kind: input, shape index: {}]   ;;  %s1118_s4 = inlined_call_operand.hbm [shape: f32[2,128], index: 4, kind: output, shape index: {}]  }
   0x1   :  { %11 = vsyncpa [#allocation4 + $0x1], 0 }
   0x2   :  { %12 = vsyncpa [#allocation7], 0 }
   0x3   :  { %13 = vsyncpa [#allocation5], 0  ;;  %s915_s15 = smov 0   ;;  %s917_s16 = smov 0  }
   0x4   :  { %s919_s17 = smov 0   ;;  %s921_s18 = smov 0  }
   0x5 LB: > { %s934_s19 = sadd.s32 4294967295, %s876_s18   ;;  %p65_p0 = scmp.ne.s32.totalorder %s868_s16, %s864_s15  ;;  %s876_s18 = sphi %s921_s18, %s1134_s18   ;;  %s872_s17 = sphi %s919_s17, %s1133_s17   ;;  %s868_s16 = sphi %s917_s16, %s1132_s16   ;;  %s864_s15 = sphi %s915_s15, %s1131_s15  }
   0x6   : > { %p1119_p1 = scmp.eq.s32.totalorder %s934_s19, 0  ;;  %p514_p2 = scmp.ge.s32.totalorder %s876_s18, 1 }
   0x7   : > { %p139_p3 = scmp.lt.s32.totalorder %s876_s18, 4  ;;  %s878_s22 = smov [#allocation6]  }
   0x8   : > { %p943_p5 = por %p1119_p1, %p65_p0  ;;  %s151_s23 = sshll.u32 %s878_s22, 4  ;;  %s152_s23 = int_to_ptr.vmem [resolvable:$true] %s151_s23 }
   0x9   : > { %p947_p6 = pnand %p514_p2, %p139_p3  ;;  %s960_s25 = sadd.s32 1, %s876_s18  }
   0xa   : > { %s1122_s20 = scalar_select %p943_p5, 1, 0 }
   0xb   : > { %s1123_s21 = scalar_select %p947_p6, 1, 0 }
   0xc   : > { %p694_p7 = pneg %p947_p6  ;;  %s52_s26 = sadd.s32 1, %s872_s17 }
   0xd   : > { %s49_s27 = ssub.s32 %s876_s18, %s960_s25  ;;  %s750_s30 = scalar_lea.hbm %s1116_s2, 2048 }
   0xe   : > { %p955_p8 = pnand %p694_p7, %p1119_p1  ;;  %p751_p9 = scmp.ne.s32.totalorder %s1116_s2, %s750_s30 }
   0xf   : > { %p757_p13 = scmp.lt.u32.totalorder %s750_s30, %s1116_s2 }
  0x10   : > { %p752_p10 = pneg %p955_p8 }
  0x12   : > { %p753_p11 = pnand %p752_p10, %p751_p9 }
  0x14   : > { %p754_p12 = pneg %p753_p11 }
  0x16   : > { %p759_p0 = pnand %p757_p13, %p754_p12 }
  0x18   : > { %762 = shalt.err (!%p759_p0)
}
  0x19   : > { %s763_s9 = scalar_lea.vmem %s152_s23, 2048  ;;  %p771_p4 = scmp.lt.s32.totalorder %s152_s23, %s152_s23 }
  0x1a   : > { %p764_p2 = scmp.ne.s32.totalorder %s152_s23, %s763_s9  ;;  %p772_p1 = scmp.lt.s32.totalorder %s763_s9, %s763_s9 }
  0x1c   : > { %p766_p3 = pnand %p764_p2, %p752_p10  ;;  %p773_p5 = por %p772_p1, %p771_p4 }
  0x1e   : > { %p767_p7 = pneg %p766_p3 }
  0x20   : > { %p774_p6 = pnand %p773_p5, %p767_p7 }
  0x22   : > { %777 = shalt.err (!%p774_p6)
}
  0x23   : > { %s879_s10 = smov 128   ;;  %s880_s11 = smov 8  }
  0x24   : > { %697 = dma.hbm_to_vmem [thread:$0]  (!%p955_p8), %s1116_s2, 2048, %s152_s23, [#allocation7], %s879_s10, %s879_s10, %s880_s11  }
  0x25   : > { %p50_p1 = scmp.eq.s32.totalorder %s49_s27, 0  ;;  %p59_p4 = scmp.ne.s32.totalorder %s872_s17, %s868_s16 }
  0x26   : > { %p60_p5 = scmp.eq.s32.totalorder %s876_s18, 0  ;;  %p703_p6 = scmp.lt.s32.totalorder %s876_s18, 3 }
  0x27   : > { %s989_s14 = scalar_select %p50_p1, %s872_s17, %s52_s26  }
  0x28   : > { %p61_p9 = por %p60_p5, %p59_p4  ;;  %s175_s15 = sand.u32 1, %s872_s17  }
  0x29   : > { %s517_s22 = sshll.u32 %s175_s15, 7  ;;  %s531_s28 = sshll.u32 %s876_s18, 11 }
  0x2a   : > { %s996_s24 = scalar_lea.hbm %s1115_s1, %s531_s28  ;;  %s179_s23 = scalar_lea.vmem [#allocation3], %s517_s22 }
  0x2b   : > { %s186_s27 = sshll.u32 %s179_s23, 4  ;;  %p1000_p8 = pnand %p703_p6, %p61_p9  ;;  %s998_s27 = int_to_ptr.vmem [resolvable:$true] %s186_s27 }
  0x2c   : > { %s1004_s18 = scalar_lea.sflag [#allocation4], %s175_s15  ;;  %s778_s5 = scalar_lea.hbm %s996_s24, 2048 }
  0x2d   : > { %p779_p10 = scmp.ne.s32.totalorder %s996_s24, %s778_s5  ;;  %p780_p11 = pneg %p1000_p8 }
  0x2e   : > { %s783_s8 = scalar_lea.hbm %s1115_s1, 6144  ;;  %p784_p0 = scmp.lt.u32.totalorder %s996_s24, %s1115_s1 }
  0x2f   : > { %p781_p12 = pnand %p780_p11, %p779_p10  ;;  %p785_p2 = scmp.lt.u32.totalorder %s783_s8, %s778_s5 }
  0x30   : > { %p787_p7 = scmp.lt.u32.totalorder %s778_s5, %s996_s24 }
  0x31   : > { %p782_p13 = pneg %p781_p12  ;;  %p786_p3 = por %p785_p2, %p784_p0 }
  0x33   : > { %p788_p1 = por %p787_p7, %p786_p3 }
  0x35   : > { %p789_p4 = pnand %p788_p1, %p782_p13 }
  0x37   : > { %792 = shalt.err (!%p789_p4)
}
  0x38   : > { %s793_s13 = scalar_lea.vmem %s998_s27, 2048  ;;  %s881_s15 = smov [#allocation3]  }
  0x39   : > { %p794_p5 = scmp.ne.s32.totalorder %s998_s27, %s793_s13  ;;  %s798_s22 = sshll.u32 %s881_s15, 4  ;;  %s799_s22 = int_to_ptr.vmem [resolvable:$false] %s798_s22 }
  0x3a   : > { %s800_s28 = scalar_lea.vmem %s799_s22, 4096  ;;  %p801_p10 = scmp.lt.s32.totalorder %s998_s27, %s799_s22 }
  0x3b   : > { %p796_p6 = pnand %p794_p5, %p780_p11  ;;  %p802_p12 = scmp.lt.s32.totalorder %s800_s28, %s793_s13 }
  0x3d   : > { %p797_p9 = pneg %p796_p6  ;;  %p803_p0 = por %p802_p12, %p801_p10 }
  0x3f   : > { %p804_p2 = pnand %p803_p0, %p797_p9 }
  0x41   : > { %807 = shalt.err (!%p804_p2)
}
  0x42   : > { %701 = dma.hbm_to_vmem [thread:$0]  (!%p1000_p8), %s996_s24, 2048, %s998_s27, %s1004_s18, %s879_s10, %s879_s10, %s880_s11  }
  0x43   : > { %p1126_p11 = scmp.ne.s32.totalorder %s1123_s21, 0 }
  0x44   : > { %s200_s29 = sand.u32 (!%p1126_p11), 1, %s868_s16   ;;  %p1127_p13 = scmp.ne.s32.totalorder (!%p1126_p11), %s1122_s20, 0 }
  0x45   : > { %198 = sbr.rel (%p1126_p11) target bundleno = 592 (0x250), region = 36  ;;  %s521_s30 = sshll.u32 (!%p1126_p11), %s200_s29, 7 }
  0x46   : > { %s201_s23 = scalar_lea.sflag (!%p1126_p11), [#allocation4], %s200_s29  ;;  %s1038_s5 = scalar_lea.vmem (!%p1126_p11), [#allocation3], %s521_s30 }
  0x4c   : > { %851 = dma.done.wait (%p1127_p13), %s201_s23, 2048  }
  0x4d   : > { %853 = vsyncadd (%p1127_p13), %s201_s23, 4294965248  ;;  %p1128_p3 = scmp.eq.s32.totalorder %s934_s19, 0 }
  0x4f   : > { %855 = dma.done.wait (%p1128_p3), [#allocation7], 2048   ;;  %p1129_p8 = pmov %p1128_p3 }
  0x50   : > { %p232_p7 = scmp.lt.s32.totalorder %s934_s19, 2  ;;  %p1130_p1 = scmp.ne.s32.totalorder %s934_s19, 0 }
  0x51   : > { %857 = vsyncadd (%p1129_p8), [#allocation7], 4294965248  ;;  %v882_v0 = vmov (!%p1130_p1), 0.0  }
  0x52   : > { %s233_s21 = scalar_select %p232_p7, %s934_s19, 2 }
  0x53   : > { %240 = sbr.rel (%p1130_p1) target bundleno = 90 (0x5a), region = 48  ;;  %241 = vst [vmem:[#allocation2] sm:$0x3] (!%p1130_p1), %v882_v0 }
  0x54   : > { %s523_s10 = sshll.u32 %s233_s21, 1 }
  0x55   : > { %s1053_s27 = scalar_lea.vmem %s1114_s0, %s523_s10 }
  0x5a PF: > { %v244_v1 = vld [vmem:[%s1038_s5] sm:$0xff]  ;;  %v245_v2 = vld [vmem:[%s1038_s5 + $0x8] sm:$0xff]  ;;  %v246_v3 = vld [vmem:[%s1038_s5 + $0x10] sm:$0xff]  ;;  %v883_v4 = vmov 0.0|0.0   ;;  %vm884_vm0 = vmmov 0   ;;  %v885_v7 = vmov 0.0  }
  0x5b   : > { %636 = vmatprep.subr.bf16.mxu0 %v883_v4  ;;  %v637_v5 = vpack.c.bf16 %v245_v2, %v244_v1  ;;  %v247_v6 = vld [vmem:[%s1038_s5 + $0x18] sm:$0xff]  ;;  %598 = vmatprep.mubr.msk.f32.mxu0 %vm884_vm0, %v885_v7  ;;  %v248_v9 = vld [vmem:[%s1038_s5 + $0x20] sm:$0xff]  ;;  %v249_v10 = vld [vmem:[%s1038_s5 + $0x28] sm:$0xff]  ;;  %p525_p4 = scmp.ne.s32.totalorder %s934_s19, 2 }
  0x5c   : > { %v640_v8 = vpack.c.bf16 %v247_v6, %v246_v3  ;;  %v643_v11 = vpack.c.bf16 %v249_v10, %v248_v9  ;;  %v250_v12 = vld [vmem:[%s1038_s5 + $0x30] sm:$0xff]  ;;  %v251_v13 = vld [vmem:[%s1038_s5 + $0x38] sm:$0xff]  ;;  %v252_v15 = vld [vmem:[%s1038_s5 + $0x40] sm:$0xff]  ;;  %v886_v35 = vmov (!%p525_p4), 0.0|0.0   ;;  %vm887_vm1 = vmmov (!%p525_p4), 0  }
  0x5d   : > { %638 = vmatpush3.bf16.msra.mxu0 %v637_v5  ;;  %v646_v14 = vpack.c.bf16 %v251_v13, %v250_v12  ;;  %v253_v16 = vld [vmem:[%s1038_s5 + $0x48] sm:$0xff]  ;;  %v254_v18 = vld [vmem:[%s1038_s5 + $0x50] sm:$0xff]  ;;  %v255_v19 = vld [vmem:[%s1038_s5 + $0x58] sm:$0xff]  ;;  %v888_v38 = vmov (!%p525_p4), 0.0  }
  0x5e   : > { %639 = vmatprep.subr.bf16.mxu0 %v883_v4  ;;  %v649_v17 = vpack.c.bf16 %v253_v16, %v252_v15  ;;  %v652_v20 = vpack.c.bf16 %v255_v19, %v254_v18  ;;  %v256_v21 = vld [vmem:[%s1038_s5 + $0x60] sm:$0xff]  ;;  %v257_v22 = vld [vmem:[%s1038_s5 + $0x68] sm:$0xff]  ;;  %v258_v24 = vld [vmem:[%s1038_s5 + $0x70] sm:$0xff] }
  0x5f   : > { %v655_v23 = vpack.c.bf16 %v257_v22, %v256_v21  ;;  %v259_v25 = vld [vmem:[%s1038_s5 + $0x78] sm:$0xff]  ;;  %v243_v27 = vld [vmem:[%s1053_s27] sm:$0x3]  ;;  %v340_v32 = vld [vmem:[#allocation6] sm:$0xff] (!%p525_p4) }
  0x60   : > { %v658_v26 = vpack.c.bf16 %v259_v25, %v258_v24  ;;  %v242_v28 = vld [vmem:[#allocation2] sm:$0x3]  ;;  %v341_v33 = vld [vmem:[#allocation6 + $0x8] sm:$0xff] (!%p525_p4)  ;;  %v342_v34 = vld [vmem:[#allocation6 + $0x10] sm:$0xff] (!%p525_p4) }
  0x61   : > { %641 = vmatpush3.bf16.msra.mxu0 %v640_v8  ;;  %v661_v36 = vpack.c.bf16 (!%p525_p4), %v341_v33, %v340_v32  ;;  %v343_v37 = vld [vmem:[#allocation6 + $0x18] sm:$0xff] (!%p525_p4)  ;;  %v344_v40 = vld [vmem:[#allocation6 + $0x20] sm:$0xff] (!%p525_p4)  ;;  %v345_v41 = vld [vmem:[#allocation6 + $0x28] sm:$0xff] (!%p525_p4) }
  0x62   : > { %642 = vmatprep.subr.bf16.mxu0 %v883_v4  ;;  %v664_v39 = vpack.c.bf16 (!%p525_p4), %v343_v37, %v342_v34  ;;  %v667_v42 = vpack.c.bf16 (!%p525_p4), %v345_v41, %v344_v40  ;;  %v346_v43 = vld [vmem:[#allocation6 + $0x30] sm:$0xff] (!%p525_p4)  ;;  %v347_v44 = vld [vmem:[#allocation6 + $0x38] sm:$0xff] (!%p525_p4)  ;;  %v348_v46 = vld [vmem:[#allocation6 + $0x40] sm:$0xff] (!%p525_p4) }
  0x63   : > { %v670_v45 = vpack.c.bf16 (!%p525_p4), %v347_v44, %v346_v43  ;;  %v349_v47 = vld [vmem:[#allocation6 + $0x48] sm:$0xff] (!%p525_p4)  ;;  %v350_v49 = vld [vmem:[#allocation6 + $0x50] sm:$0xff] (!%p525_p4)  ;;  %v351_v50 = vld [vmem:[#allocation6 + $0x58] sm:$0xff] (!%p525_p4) }
  0x64   : > { %v673_v48 = vpack.c.bf16 (!%p525_p4), %v349_v47, %v348_v46  ;;  %v676_v51 = vpack.c.bf16 (!%p525_p4), %v351_v50, %v350_v49  ;;  %v352_v53 = vld [vmem:[#allocation6 + $0x60] sm:$0xff] (!%p525_p4)  ;;  %v353_v54 = vld [vmem:[#allocation6 + $0x68] sm:$0xff] (!%p525_p4)  ;;  %v354_v57 = vld [vmem:[#allocation6 + $0x70] sm:$0xff] (!%p525_p4) }
  0x65   : > { %644 = vmatpush3.bf16.msra.mxu0 %v643_v11  ;;  %v679_v56 = vpack.c.bf16 (!%p525_p4), %v353_v54, %v352_v53  ;;  %v355_v58 = vld [vmem:[#allocation6 + $0x78] sm:$0xff] (!%p525_p4)  ;;  %v526_v62 = vld [vmem:[%s1117_s3] ss:$0 sm:$0xff] (!%p525_p4) }
  0x66   : > { %645 = vmatprep.subr.bf16.mxu0 %v883_v4  ;;  %v682_v60 = vpack.c.bf16 (!%p525_p4), %v355_v58, %v354_v57 }
  0x69   : > { %647 = vmatpush3.bf16.msra.mxu0 %v646_v14 }
  0x6a   : > { %648 = vmatprep.subr.bf16.mxu0 %v883_v4 }
  0x6d   : > { %650 = vmatpush3.bf16.msra.mxu0 %v649_v17 }
  0x6e   : > { %651 = vmatprep.subr.bf16.mxu0 %v883_v4 }
  0x71   : > { %653 = vmatpush3.bf16.msra.mxu0 %v652_v20 }
  0x72   : > { %654 = vmatprep.subr.bf16.mxu0 %v883_v4 }
  0x75   : > { %656 = vmatpush3.bf16.msra.mxu0 %v655_v23 }
  0x76   : > { %657 = vmatprep.subr.bf16.mxu0 %v883_v4 }
  0x79   : > { %659 = vmatpush3.bf16.msra.mxu0 %v658_v26 }
  0x7a   : > { %660 = vmatprep.subr.bf16.mxu0 (!%p525_p4), %v886_v35 }
  0x7c   : > { %599 = vmatmul.mubr.f32.vlgmr.msra.gmra.mrb[0].mxu0 %v243_v27 }
  0x7d   : > { %633 = vmatprep.mubr.msk.f32.mxu0 (!%p525_p4), %vm887_vm1, %v888_v38  ;;  %662 = vmatpush3.bf16.msra.mxu0 (!%p525_p4), %v661_v36 }
  0x7e   : > { %663 = vmatprep.subr.bf16.mxu0 (!%p525_p4), %v886_v35 }
  0x81   : > { %665 = vmatpush3.bf16.msra.mxu0 (!%p525_p4), %v664_v39 }
  0x82   : > { %666 = vmatprep.subr.bf16.mxu0 (!%p525_p4), %v886_v35 }
  0x85   : > { %668 = vmatpush3.bf16.msra.mxu0 (!%p525_p4), %v667_v42 }
  0x86   : > { %669 = vmatprep.subr.bf16.mxu0 (!%p525_p4), %v886_v35 }
  0x89   : > { %671 = vmatpush3.bf16.msra.mxu0 (!%p525_p4), %v670_v45 }
  0x8a   : > { %672 = vmatprep.subr.bf16.mxu0 (!%p525_p4), %v886_v35 }
  0x8d   : > { %674 = vmatpush3.bf16.msra.mxu0 (!%p525_p4), %v673_v48 }
  0x8e   : > { %675 = vmatprep.subr.bf16.mxu0 (!%p525_p4), %v886_v35 }
  0x91   : > { %677 = vmatpush3.bf16.msra.mxu0 (!%p525_p4), %v676_v51 }
  0x92   : > { %678 = vmatprep.subr.bf16.mxu0 (!%p525_p4), %v886_v35 }
  0x95   : > { %680 = vmatpush3.bf16.msra.mxu0 (!%p525_p4), %v679_v56 }
  0x96   : > { %681 = vmatprep.subr.bf16.mxu0 (!%p525_p4), %v886_v35 }
  0x99   : > { %683 = vmatpush3.bf16.msra.mxu0 (!%p525_p4), %v682_v60 }
 0x14c   : > { %335 = sbr.rel (%p525_p4) target bundleno = 567 (0x237), region = 52 }
 0x14f   : > { %v326_v29 = vpop.f32.mrb[0].mxu0 }
 0x150   : > { %v330_v30 = vadd.f32 %v326_v29, %v242_v28  ;;  %v600_v31 = vpop.f32.mrb[1].mxu0 }
 0x152   : > { %331 = vst [vmem:[#allocation2] sm:$0x3] %v330_v30 }
 0x159   : > { %v336_v52 = vld [vmem:[#allocation2] sm:$0x3] }
 0x15a   : > { %v337_v55 = vmax.f32 %v336_v52, 0.0 }
 0x15c   : > { %v338_v59 = vmul.f32 2.0, %v337_v55 }
 0x15e   : > { %v339_v61 = vfloor.f32 %v338_v59 }
 0x160   : > { %634 = vmatmul.mubr.f32.vlgmr.msra.gmra.mrb[0].mxu0 %v339_v61 }
 0x233   : > { %v429_v63 = vpop.f32.mrb[0].mxu0 }
 0x234   : > { %v430_v0 = vadd.f32 %v526_v62, %v429_v63  ;;  %v635_v1 = vpop.f32.mrb[1].mxu0 }
 0x236   : > { %433 = vst [vmem:[#allocation8] sm:$0x3] %v430_v0 }
 0x237 PF: > { %p705_p5 = scmp.eq.s32.totalorder %s934_s19, 2  ;;  %s889_s18 = smov [#allocation8]  }
 0x238   : > { %s441_s6 = sshll.u32 %s889_s18, 4  ;;  %s442_s6 = int_to_ptr.vmem [resolvable:$true] %s441_s6 }
 0x239   : > { %s808_s7 = scalar_lea.vmem %s442_s6, 32  ;;  %p815_p12 = scmp.lt.s32.totalorder %s442_s6, %s442_s6 }
 0x23a   : > { %p809_p6 = scmp.ne.s32.totalorder %s442_s6, %s808_s7  ;;  %p816_p0 = scmp.lt.s32.totalorder %s808_s7, %s808_s7 }
 0x23c   : > { %p810_p9 = pnand %p809_p6, %p705_p5  ;;  %p817_p2 = por %p816_p0, %p815_p12 }
 0x23e   : > { %p811_p10 = pneg %p810_p9 }
 0x240   : > { %p818_p11 = pnand %p817_p2, %p811_p10 }
 0x242   : > { %821 = shalt.err (!%p818_p11)
}
 0x243   : > { %s822_s12 = scalar_lea.hbm %s1118_s4, 32 }
 0x244   : > { %p823_p13 = scmp.ne.s32.totalorder %s1118_s4, %s822_s12  ;;  %p828_p7 = scmp.lt.u32.totalorder %s822_s12, %s1118_s4 }
 0x246   : > { %p824_p3 = pnand %p823_p13, %p705_p5 }
 0x248   : > { %p825_p8 = pneg %p824_p3 }
 0x24a   : > { %p830_p1 = pnand %p828_p7, %p825_p8 }
 0x24c   : > { %833 = shalt.err (!%p830_p1)
}
 0x24d   : > { %691 = dma.vmem_to_hbm [thread:$0]  (%p705_p5), %s442_s6, 32, %s1118_s4, [#allocation5]  }
 0x24e   : > { %859 = dma.done.wait (%p705_p5), [#allocation5], 32  }
 0x24f   : > { %861 = vsyncadd (%p705_p5), [#allocation5], 4294967264 }
 0x250 PF: > { %p16_p4 = scmp.ge.s32.totalorder %s960_s25, 5   ;;  %s1131_s15 = smov %s868_s16 }
 0x251   : > { %s1132_s16 = smov %s872_s17  ;;  %s1133_s17 = smov %s989_s14 }
 0x252   : > { %s1134_s18 = smov %s960_s25  ;;  %18 = sbr.rel (!%p16_p4) target bundleno = 5 (0x5), region = 88 }
 0x259   :  { %454 = vsyncpa [#allocation4], 1 }
 0x25a   :  { %456 = vsyncpa [#allocation4 + $0x1], 1 }
 0x25b   :  { %457 = vsyncpa [#allocation7], 1 }
 0x25c   :  { %458 = vsyncpa [#allocation5], 1 }
 0x25d   :  { %460 = vsyncpa [#allocation5 + $0x1], 1 }

</bundles_post_ra>
